<compile_context>
chip_gen: v7x
topology: tpu7x:2x2x1
jax: 0.10.0
libtpu: 0.0.40
codegen_flags: <defaults>
</compile_context>

<pallas_src>
import jax
import jax.numpy as jnp
from jax.experimental import pallas as pl
from jax.experimental.pallas import tpu as pltpu


# ---------------------------------------------------------------------------
# The single fused kernel.  Rows = edges (tile of tile_b rows), columns =
# features in PyTorch's native interleaved (channel*H + head) order.
# ---------------------------------------------------------------------------
def _fused_kernel(in_ref, win_ref, b_ref, we2_ref, w1_ref, w2_ref, gsum_ref,
                  out_ref):
    hid, dim_edge = we2_ref.shape            # nn_edge hidden, dim_edge
    dim_qe = w1_ref.shape[0]                 # dim_node + dim_edge
    dim_atten = w2_ref.shape[1]

    # One MXU pass per tile: [nn_edge hidden | q_proj | e_proj | v_proj]
    slab = (jnp.dot(in_ref[...], win_ref[...],
                    preferred_element_type=jnp.float32) + b_ref[0:1, :])

    # nn_edge second layer
    h = jnp.maximum(slab[:, :hid], 0.0)
    ef = (jnp.dot(h.astype(jnp.bfloat16), we2_ref[...],
                  preferred_element_type=jnp.float32) + b_ref[1:2, :dim_edge])

    # per-head attention MLP on [q_proj | e_proj] (adjacent in the slab);
    # weights are block-diagonal per head, so the interleaved layout never moves.
    qe = slab[:, hid:hid + dim_qe]
    vp = slab[:, hid + dim_qe:hid + dim_qe + dim_atten]
    h1 = jnp.maximum(
        jnp.dot(qe.astype(jnp.bfloat16), w1_ref[...],
                preferred_element_type=jnp.float32) + b_ref[2:3, :dim_qe], 0.0)
    logits = (jnp.dot(h1.astype(jnp.bfloat16), w2_ref[...],
                      preferred_element_type=jnp.float32)
              + b_ref[3:4, :dim_atten])

    # per-head softmax over channels.  The row max is constant within each head
    # group, so subtracting it leaves the softmax unchanged while keeping exp()
    # bounded.  gsum broadcasts each head's denominator back to its columns; the
    # clamp guards against a far-below-max head underflowing to a zero denom.
    m = jnp.max(logits, axis=-1, keepdims=True)
    p = jnp.exp(logits - m)
    denom = jnp.dot(p.astype(jnp.bfloat16), gsum_ref[...],
                    preferred_element_type=jnp.float32)
    denom = jnp.maximum(denom, 1e-20)
    prob = p * pl.reciprocal(denom, approx=True)

    x = prob * vp                                    # einsum('bm,bm->bm')

    # lane-dense packed store: [x | edge_feature | prob | 0-pad to 128k lanes]
    n_out = dim_atten + dim_edge + dim_atten
    pad = out_ref.shape[1] - n_out
    pieces = [x, ef, prob]
    if pad > 0:
        pieces.append(jnp.zeros((x.shape[0], pad), jnp.float32))
    out_ref[...] = jnp.concatenate(pieces, axis=-1)


# ---------------------------------------------------------------------------
# Host-side (one-time) weight fusion: one wide input weight, block-diagonal
# per-head MLP weights, 0/1 per-head sum matrix, all biases packed into one
# (4, n_slab) array.  Matmul operands in bf16, biases in f32.
# ---------------------------------------------------------------------------
def make_fused_params(params, dim_node, dim_edge, dim_atten, num_heads):
    H = num_heads
    d_n, d_e, d_o = dim_node // H, dim_edge // H, dim_atten // H
    f32, bf16 = jnp.float32, jnp.bfloat16
    hid = dim_node + dim_edge
    dim_qe = dim_node + dim_edge
    n_slab = hid + dim_node + dim_edge + dim_atten
    z = lambda r, c: jnp.zeros((r, c), f32)
    eye_h = jnp.eye(H, dtype=f32)

    # rows = [query | edge | value], cols = [nn_edge hidden | q_proj | e_proj | v_proj]
    win = jnp.concatenate([
        jnp.concatenate([params["we1_q"], params["wq"],
                         z(dim_node, dim_edge), z(dim_node, dim_atten)], axis=1),
        jnp.concatenate([params["we1_e"], z(dim_edge, dim_node),
                         params["wep"], z(dim_edge, dim_atten)], axis=1),
        jnp.concatenate([params["we1_v"], z(dim_node, dim_node),
                         z(dim_node, dim_edge), params["wv"]], axis=1),
    ], axis=0)

    w1, w2 = params["w1"], params["w2"]
    # rows of w1_big are indexed by the interleaved (c*H + h) projection columns
    w1_big = jnp.concatenate(
        [jnp.kron(w1[:d_n, :], eye_h), jnp.kron(w1[d_n:, :], eye_h)], axis=0)
    w2_big = jnp.kron(w2, eye_h)
    b1_big = jnp.repeat(params["b1"], H, axis=1)
    b2_big = jnp.repeat(params["b2"], H, axis=1)
    gsum = jnp.kron(jnp.ones((d_o, d_o), f32), eye_h)   # per-head sum broadcaster

    b_slab = jnp.concatenate(
        [params["be1"], params["bq"], params["bep"], params["bv"]], axis=1)
    bias = jnp.zeros((4, n_slab), f32)
    bias = bias.at[0, :].set(b_slab[0])
    bias = bias.at[1, :dim_edge].set(params["be2"][0])
    bias = bias.at[2, :dim_qe].set(b1_big[0])
    bias = bias.at[3, :dim_atten].set(b2_big[0])

    return {
        "win": win.astype(bf16),
        "bias": bias,
        "we2": params["we2"].astype(bf16),
        "w1_big": w1_big.astype(bf16),
        "w2_big": w2_big.astype(bf16),
        "gsum": gsum.astype(bf16),
    }


# ---------------------------------------------------------------------------
# Forward pass (matches the PyTorch module's forward)
# ---------------------------------------------------------------------------
def multi_headed_edge_attention(fused, query, edge, value, num_heads, *, tile_b=1024):
    B, dim_node = query.shape
    dim_edge = edge.shape[1]
    hid = fused["we2"].shape[0]
    dim_atten = fused["w2_big"].shape[1]
    dim_qe = fused["w1_big"].shape[0]
    H = num_heads
    d_o = dim_atten // H
    dim_in = 2 * dim_node + dim_edge
    n_slab = fused["win"].shape[1]
    n_out = dim_atten + dim_edge + dim_atten
    n_out_pad = ((n_out + 127) // 128) * 128      # lane-dense output slab (unmasked vst)

    # single bf16 input stream (halves HBM->VMEM input traffic, 1 DMA / 1 matmul)
    x_in = jnp.concatenate([query, edge, value], axis=1).astype(jnp.bfloat16)

    # Row tiling: big tiles amortize the ~0.35us per-grid-step overhead; keep at
    # least 2 tiles when possible so "parallel" feeds both TensorCores on v7x.
    tile_b = min(tile_b, B)
    if tile_b == B and B >= 32:
        tile_b = B // 2
    if tile_b >= 16:
        tile_b = (tile_b // 16) * 16              # bf16 sublane packing
    else:
        tile_b = B                                # tiny inputs: one full-height tile
    grid = (pl.cdiv(B, tile_b),)
    # TODO(synk): when B % tile_b != 0 the padded rows of the last tile compute on
    #             uninitialized VMEM; their results are discarded but may be non-finite.

    def row_spec(cols):
        return pl.BlockSpec((tile_b, cols), lambda i: (i, 0))

    def const_spec(arr):                          # weights resident across all tiles
        return pl.BlockSpec(arr.shape, lambda i: (0, 0))

    weight_order = ("win", "bias", "we2", "w1_big", "w2_big", "gsum")
    weights = [fused[k] for k in weight_order]

    flops = 2 * B * (dim_in * n_slab + hid * dim_edge + dim_qe * dim_qe
                     + dim_qe * dim_atten + dim_atten * dim_atten)
    weight_bytes = sum(int(w.size) * w.dtype.itemsize for w in weights)
    bytes_accessed = B * (2 * dim_in + 4 * n_out_pad) + weight_bytes
    cost = pl.CostEstimate(flops=flops, transcendentals=B * dim_atten,
                           bytes_accessed=bytes_accessed)

    out = pl.pallas_call(
        _fused_kernel,
        grid=grid,
        in_specs=[row_spec(dim_in)] + [const_spec(w) for w in weights],
        out_specs=row_spec(n_out_pad),
        out_shape=jax.ShapeDtypeStruct((B, n_out_pad), jnp.float32),
        compiler_params=pltpu.CompilerParams(
            dimension_semantics=("parallel",),      # v7x: 2 TCs share the row tiles
            vmem_limit_bytes=48 * 1024 * 1024),     # fits 64 MiB v7x with headroom
        cost_estimate=cost,
    )(x_in, *weights)

    # split the packed output slab (cheap XLA slices; layouts already match PyTorch)
    x = out[:, :dim_atten]
    ef = out[:, dim_atten:dim_atten + dim_edge]
    prob = out[:, dim_atten + dim_edge:n_out].reshape(B, d_o, H)
    return x, ef, prob


# ---------------------------------------------------------------------------
# Deterministic parameter init (weights stored as (in, out), biases as (1, out))
# ---------------------------------------------------------------------------
def init_params(key, dim_node, dim_edge, dim_atten, num_heads):
    H = num_heads
    d_n, d_e, d_o = dim_node // H, dim_edge // H, dim_atten // H
    hid = dim_node + dim_edge
    ks = jax.random.split(key, 16)

    def w(k, shape, scale=0.1):
        return (scale * jax.random.normal(k, shape)).astype(jnp.float32)

    return {
        "we1_q": w(ks[0], (dim_node, hid)),
        "we1_e": w(ks[1], (dim_edge, hid)),
        "we1_v": w(ks[2], (dim_node, hid)),
        "be1":   w(ks[3], (1, hid), 0.01),
        "we2":   w(ks[4], (hid, dim_edge)),
        "be2":   w(ks[5], (1, dim_edge), 0.01),
        "wq":    w(ks[6], (dim_node, dim_node)),
        "bq":    w(ks[7], (1, dim_node), 0.01),
        "wep":   w(ks[8], (dim_edge, dim_edge)),
        "bep":   w(ks[9], (1, dim_edge), 0.01),
        "wv":    w(ks[10], (dim_node, dim_atten)),
        "bv":    w(ks[11], (1, dim_atten), 0.01),
        "w1":    w(ks[12], (d_n + d_e, d_n + d_e)),
        "b1":    w(ks[13], (1, d_n + d_e), 0.01),
        "w2":    w(ks[14], (d_n + d_e, d_o)),
        "b2":    w(ks[15], (1, d_o), 0.01),
    }


# ---------------------------------------------------------------------------
# Pure-JAX f32 reference replicating the PyTorch forward exactly (verification)
# ---------------------------------------------------------------------------
def reference(params, query, edge, value, num_heads):
    hp = jax.lax.Precision.HIGHEST
    cat = jnp.concatenate([query, edge, value], axis=1)
    we1 = jnp.concatenate([params["we1_q"], params["we1_e"], params["we1_v"]], axis=0)
    h = jnp.maximum(jnp.dot(cat, we1, precision=hp) + params["be1"], 0.0)
    ef = jnp.dot(h, params["we2"], precision=hp) + params["be2"]
    vproj = jnp.dot(value, params["wv"], precision=hp) + params["bv"]
    qproj = jnp.dot(query, params["wq"], precision=hp) + params["bq"]
    eproj = jnp.dot(edge, params["wep"], precision=hp) + params["bep"]
    B, H = query.shape[0], num_heads
    d_n = qproj.shape[1] // H
    d_e = eproj.shape[1] // H
    qh = qproj.reshape(B, d_n, H)
    eh = eproj.reshape(B, d_e, H)
    xin = jnp.concatenate([qh, eh], axis=1)                                 # (B, C, H)
    h1 = jnp.maximum(jnp.einsum('bch,co->boh', xin, params["w1"], precision=hp)
                     + params["b1"][0][None, :, None], 0.0)
    logits = (jnp.einsum('bch,co->boh', h1, params["w2"], precision=hp)
              + params["b2"][0][None, :, None])
    prob = jax.nn.softmax(logits, axis=1)
    x = prob.reshape(B, -1) * vproj
    return x, ef, prob


if __name__ == "__main__":
    key = jax.random.PRNGKey(0)
    kq, ke, kv, kp = jax.random.split(key, 4)

    B, H = 64, 2
    dim_node, dim_edge, dim_atten = 32, 16, 32

    query = jax.random.normal(kq, (B, dim_node), jnp.float32)
    edge = jax.random.normal(ke, (B, dim_edge), jnp.float32)
    value = jax.random.normal(kv, (B, dim_node), jnp.float32)

    params = init_params(kp, dim_node, dim_edge, dim_atten, H)
    fused = make_fused_params(params, dim_node, dim_edge, dim_atten, H)

    # tile_b=32 -> 2 row tiles, exercising the parallel grid axis
    x, ef, prob = multi_headed_edge_attention(fused, query, edge, value, H, tile_b=32)
    jax.block_until_ready((x, ef, prob))

    xr, efr, probr = reference(params, query, edge, value, H)
    assert x.shape == (B, dim_atten) and ef.shape == (B, dim_edge)
    assert prob.shape == (B, dim_atten // H, H)
    # bf16 matmul inputs + f32 accumulation -> compare against the f32 reference at 2e-2
    assert jnp.allclose(x, xr, atol=2e-2, rtol=2e-2), float(jnp.max(jnp.abs(x - xr)))
    assert jnp.allclose(ef, efr, atol=2e-2, rtol=2e-2), float(jnp.max(jnp.abs(ef - efr)))
    assert jnp.allclose(prob, probr, atol=2e-2, rtol=2e-2), float(jnp.max(jnp.abs(prob - probr)))

    print("KERNEL_OK")
</pallas_src>

<mosaic_0001>
module attributes {stable_mosaic.version = 11 : i64} {
  func.func @_fused_kernel(%arg0: i32, %arg1: memref<32x80xbf16, #tpu.memory_space<vmem>>, %arg2: memref<80x128xbf16, #tpu.memory_space<vmem>>, %arg3: memref<4x128xf32, #tpu.memory_space<vmem>>, %arg4: memref<48x16xbf16, #tpu.memory_space<vmem>>, %arg5: memref<48x48xbf16, #tpu.memory_space<vmem>>, %arg6: memref<48x32xbf16, #tpu.memory_space<vmem>>, %arg7: memref<32x32xbf16, #tpu.memory_space<vmem>>, %arg8: memref<32x128xf32, #tpu.memory_space<vmem>>) attributes {dimension_semantics = [#tpu.dimension_semantics<parallel>], iteration_bounds = array<i64: 2>, scalar_prefetch = 0 : i64, scratch_operands = 0 : i64, tpu.core_type = #tpu.core_type<tc>, window_params = [{transform_indices = @transform_0, window_bounds = array<i64: 32, 80>}, {pipeline_mode = #tpu.pipeline_mode<synchronous>, transform_indices = @transform_1, window_bounds = array<i64: 80, 128>}, {pipeline_mode = #tpu.pipeline_mode<synchronous>, transform_indices = @transform_2, window_bounds = array<i64: 4, 128>}, {pipeline_mode = #tpu.pipeline_mode<synchronous>, transform_indices = @transform_3, window_bounds = array<i64: 48, 16>}, {pipeline_mode = #tpu.pipeline_mode<synchronous>, transform_indices = @transform_4, window_bounds = array<i64: 48, 48>}, {pipeline_mode = #tpu.pipeline_mode<synchronous>, transform_indices = @transform_5, window_bounds = array<i64: 48, 32>}, {pipeline_mode = #tpu.pipeline_mode<synchronous>, transform_indices = @transform_6, window_bounds = array<i64: 32, 32>}, {transform_indices = @transform_7, window_bounds = array<i64: 32, 128>}]} {
    %c0 = arith.constant 0 : index
    %c0_0 = arith.constant 0 : index
    %0 = vector.load %arg1[%c0, %c0_0] : memref<32x80xbf16, #tpu.memory_space<vmem>>, vector<32x80xbf16>
    %c0_1 = arith.constant 0 : index
    %c0_2 = arith.constant 0 : index
    %1 = vector.load %arg2[%c0_1, %c0_2] : memref<80x128xbf16, #tpu.memory_space<vmem>>, vector<80x128xbf16>
    %cst = arith.constant dense<0.000000e+00> : vector<32x128xf32>
    %2 = tpu.matmul %0, %1, %cst {dimension_numbers = #tpu.dot_dimension_numbers<[1], [0], [0], [1], [0, 0, 1, 1], [], []>} : vector<32x80xbf16>, vector<80x128xbf16>, vector<32x128xf32> -> vector<32x128xf32>
    %c0_3 = arith.constant 0 : index
    %c0_4 = arith.constant 0 : index
    %3 = vector.load %arg3[%c0_3, %c0_4] : memref<4x128xf32, #tpu.memory_space<vmem>>, vector<1x128xf32>
    %4 = vector.broadcast %3 : vector<1x128xf32> to vector<32x128xf32>
    %5 = arith.addf %2, %4 : vector<32x128xf32>
    %6 = vector.extract_strided_slice %5 {offsets = [0, 0], sizes = [32, 48], strides = [1, 1]} : vector<32x128xf32> to vector<32x48xf32>
    %cst_5 = arith.constant 0.000000e+00 : f32
    %7 = vector.broadcast %cst_5 : f32 to vector<32x48xf32>
    %8 = arith.maximumf %6, %7 : vector<32x48xf32>
    %9 = arith.truncf %8 : vector<32x48xf32> to vector<32x48xbf16>
    %c0_6 = arith.constant 0 : index
    %c0_7 = arith.constant 0 : index
    %10 = vector.load %arg4[%c0_6, %c0_7] : memref<48x16xbf16, #tpu.memory_space<vmem>>, vector<48x16xbf16>
    %cst_8 = arith.constant dense<0.000000e+00> : vector<32x16xf32>
    %11 = tpu.matmul %9, %10, %cst_8 {dimension_numbers = #tpu.dot_dimension_numbers<[1], [0], [0], [1], [0, 0, 1, 1], [], []>} : vector<32x48xbf16>, vector<48x16xbf16>, vector<32x16xf32> -> vector<32x16xf32>
    %c1 = arith.constant 1 : index
    %c0_9 = arith.constant 0 : index
    %12 = vector.load %arg3[%c1, %c0_9] : memref<4x128xf32, #tpu.memory_space<vmem>>, vector<1x16xf32>
    %13 = vector.broadcast %12 : vector<1x16xf32> to vector<32x16xf32>
    %14 = arith.addf %11, %13 : vector<32x16xf32>
    %15 = vector.extract_strided_slice %5 {offsets = [0, 48], sizes = [32, 48], strides = [1, 1]} : vector<32x128xf32> to vector<32x48xf32>
    %16 = vector.extract_strided_slice %5 {offsets = [0, 96], sizes = [32, 32], strides = [1, 1]} : vector<32x128xf32> to vector<32x32xf32>
    %17 = arith.truncf %15 : vector<32x48xf32> to vector<32x48xbf16>
    %c0_10 = arith.constant 0 : index
    %c0_11 = arith.constant 0 : index
    %18 = vector.load %arg5[%c0_10, %c0_11] : memref<48x48xbf16, #tpu.memory_space<vmem>>, vector<48x48xbf16>
    %cst_12 = arith.constant dense<0.000000e+00> : vector<32x48xf32>
    %19 = tpu.matmul %17, %18, %cst_12 {dimension_numbers = #tpu.dot_dimension_numbers<[1], [0], [0], [1], [0, 0, 1, 1], [], []>} : vector<32x48xbf16>, vector<48x48xbf16>, vector<32x48xf32> -> vector<32x48xf32>
    %c2 = arith.constant 2 : index
    %c0_13 = arith.constant 0 : index
    %20 = vector.load %arg3[%c2, %c0_13] : memref<4x128xf32, #tpu.memory_space<vmem>>, vector<1x48xf32>
    %21 = vector.broadcast %20 : vector<1x48xf32> to vector<32x48xf32>
    %22 = arith.addf %19, %21 : vector<32x48xf32>
    %cst_14 = arith.constant 0.000000e+00 : f32
    %23 = vector.broadcast %cst_14 : f32 to vector<32x48xf32>
    %24 = arith.maximumf %22, %23 : vector<32x48xf32>
    %25 = arith.truncf %24 : vector<32x48xf32> to vector<32x48xbf16>
    %c0_15 = arith.constant 0 : index
    %c0_16 = arith.constant 0 : index
    %26 = vector.load %arg6[%c0_15, %c0_16] : memref<48x32xbf16, #tpu.memory_space<vmem>>, vector<48x32xbf16>
    %cst_17 = arith.constant dense<0.000000e+00> : vector<32x32xf32>
    %27 = tpu.matmul %25, %26, %cst_17 {dimension_numbers = #tpu.dot_dimension_numbers<[1], [0], [0], [1], [0, 0, 1, 1], [], []>} : vector<32x48xbf16>, vector<48x32xbf16>, vector<32x32xf32> -> vector<32x32xf32>
    %c3 = arith.constant 3 : index
    %c0_18 = arith.constant 0 : index
    %28 = vector.load %arg3[%c3, %c0_18] : memref<4x128xf32, #tpu.memory_space<vmem>>, vector<1x32xf32>
    %29 = vector.broadcast %28 : vector<1x32xf32> to vector<32x32xf32>
    %30 = arith.addf %27, %29 : vector<32x32xf32>
    %cst_19 = arith.constant dense<0xFF800000> : vector<32xf32>
    %31 = vector.multi_reduction <maximumf>, %30, %cst_19 [1] : vector<32x32xf32> to vector<32xf32>
    %32 = vector.shape_cast %31 : vector<32xf32> to vector<32x1xf32>
    %33 = vector.broadcast %32 : vector<32x1xf32> to vector<32x32xf32>
    %34 = arith.subf %30, %33 : vector<32x32xf32>
    %35 = math.exp %34 : vector<32x32xf32>
    %36 = arith.truncf %35 : vector<32x32xf32> to vector<32x32xbf16>
    %c0_20 = arith.constant 0 : index
    %c0_21 = arith.constant 0 : index
    %37 = vector.load %arg7[%c0_20, %c0_21] : memref<32x32xbf16, #tpu.memory_space<vmem>>, vector<32x32xbf16>
    %cst_22 = arith.constant dense<0.000000e+00> : vector<32x32xf32>
    %38 = tpu.matmul %36, %37, %cst_22 {dimension_numbers = #tpu.dot_dimension_numbers<[1], [0], [0], [1], [0, 0, 1, 1], [], []>} : vector<32x32xbf16>, vector<32x32xbf16>, vector<32x32xf32> -> vector<32x32xf32>
    %cst_23 = arith.constant 9.99999968E-21 : f32
    %39 = vector.broadcast %cst_23 : f32 to vector<32x32xf32>
    %40 = arith.maximumf %38, %39 : vector<32x32xf32>
    %41 = tpu.reciprocal %40 {approx = true} : vector<32x32xf32> -> vector<32x32xf32>
    %42 = arith.mulf %35, %41 : vector<32x32xf32>
    %43 = arith.mulf %42, %16 : vector<32x32xf32>
    %cst_24 = arith.constant 0.000000e+00 : f32
    %44 = vector.broadcast %cst_24 : f32 to vector<32x48xf32>
    %45 = tpu.concatenate %43, %14, %42, %44 in 1 : vector<32x32xf32>, vector<32x16xf32>, vector<32x32xf32>, vector<32x48xf32> -> vector<32x128xf32>
    %c0_25 = arith.constant 0 : index
    %c0_26 = arith.constant 0 : index
    %46 = vector.load %arg8[%c0_25, %c0_26] : memref<32x128xf32, #tpu.memory_space<vmem>>, vector<32x128xf32>
    tpu.vector_store %arg8[%c0_25, %c0_26], %45 {strides = array<i32>} : memref<32x128xf32, #tpu.memory_space<vmem>>, vector<32x128xf32>,
    return
  }
  func.func @transform_0(%arg0: i32) -> (i32, i32) {
    %c0_i32 = arith.constant 0 : i32
    %c0_i32_0 = arith.constant 0 : i32
    return %arg0, %c0_i32 : i32, i32
  }
  func.func @transform_1(%arg0: i32) -> (i32, i32) {
    %c0_i32 = arith.constant 0 : i32
    %c0_i32_0 = arith.constant 0 : i32
    %c0_i32_1 = arith.constant 0 : i32
    return %c0_i32, %c0_i32_0 : i32, i32
  }
  func.func @transform_2(%arg0: i32) -> (i32, i32) {
    %c0_i32 = arith.constant 0 : i32
    %c0_i32_0 = arith.constant 0 : i32
    %c0_i32_1 = arith.constant 0 : i32
    return %c0_i32, %c0_i32_0 : i32, i32
  }
  func.func @transform_3(%arg0: i32) -> (i32, i32) {
    %c0_i32 = arith.constant 0 : i32
    %c0_i32_0 = arith.constant 0 : i32
    %c0_i32_1 = arith.constant 0 : i32
    return %c0_i32, %c0_i32_0 : i32, i32
  }
  func.func @transform_4(%arg0: i32) -> (i32, i32) {
    %c0_i32 = arith.constant 0 : i32
    %c0_i32_0 = arith.constant 0 : i32
    %c0_i32_1 = arith.constant 0 : i32
    return %c0_i32, %c0_i32_0 : i32, i32
  }
  func.func @transform_5(%arg0: i32) -> (i32, i32) {
    %c0_i32 = arith.constant 0 : i32
    %c0_i32_0 = arith.constant 0 : i32
    %c0_i32_1 = arith.constant 0 : i32
    return %c0_i32, %c0_i32_0 : i32, i32
  }
  func.func @transform_6(%arg0: i32) -> (i32, i32) {
    %c0_i32 = arith.constant 0 : i32
    %c0_i32_0 = arith.constant 0 : i32
    %c0_i32_1 = arith.constant 0 : i32
    return %c0_i32, %c0_i32_0 : i32, i32
  }
  func.func @transform_7(%arg0: i32) -> (i32, i32) {
    %c0_i32 = arith.constant 0 : i32
    %c0_i32_0 = arith.constant 0 : i32
    return %arg0, %c0_i32 : i32, i32
  }
}

</mosaic_0001>

<bundles_post_ra>
// kernel: tpu_custom_call.1
= control target key start
LH: loop header
LB: loop body
LE: loop exit
PB: predicated region body
PF: predicated region fallthrough
CT: control target
= control target key end

     0   :  { %12 = vsyncpa [#allocation3], 0  ;;  %s1642_s0 = inlined_call_operand.vmem [shape: bf16[64,80], index: 0, kind: input, shape index: {}]   ;;  %s1643_s1 = inlined_call_operand.vmem [shape: bf16[80,128], index: 1, kind: input, shape index: {}]   ;;  %s1644_s2 = inlined_call_operand.hbm [shape: f32[4,128], index: 2, kind: input, shape index: {}]   ;;  %s1645_s3 = inlined_call_operand.vmem [shape: bf16[48,16], index: 3, kind: input, shape index: {}]   ;;  %s1646_s4 = inlined_call_operand.hbm [shape: bf16[48,48], index: 4, kind: input, shape index: {}]   ;;  %s1647_s5 = inlined_call_operand.vmem [shape: bf16[48,32], index: 5, kind: input, shape index: {}]   ;;  %s1648_s6 = inlined_call_operand.vmem [shape: bf16[32,32], index: 6, kind: input, shape index: {}]   ;;  %s1649_s7 = inlined_call_operand.hbm [shape: f32[64,128], index: 7, kind: output, shape index: {}]  }
   0x1   :  { %13 = vsyncpa [#allocation6], 0 }
   0x2   :  { %14 = vsyncpa [#allocation4], 0 }
   0x3   :  { %16 = vsyncpa [#allocation4 + $0x1], 0  ;;  %s1379_s24 = smov 0   ;;  %s1381_s25 = smov 0  }
   0x4   :  { %s1383_s26 = smov 0   ;;  %s1385_s27 = smov 0  }
   0x5 LB: > { %s1400_s28 = sadd.s32 4294967295, %s1327_s27   ;;  %s973_s29 = sadd.s32 4294967294, %s1327_s27   ;;  %s1327_s27 = sphi %s1385_s27, %s1667_s27   ;;  %s1323_s26 = sphi %s1383_s26, %s1666_s26   ;;  %s1319_s25 = sphi %s1381_s25, %s1665_s25   ;;  %s1315_s24 = sphi %s1379_s24, %s1664_s24  }
   0x6   : > { %s1404_s30 = sadd.s32 1, %s1327_s27   ;;  %s181_s8 = sadd.s32 1, %s1323_s26 }
   0x7   : > { %s178_s9 = ssub.s32 %s1327_s27, %s1404_s30  ;;  %p191_p0 = scmp.ne.s32.totalorder %s1323_s26, %s1319_s25 }
   0x8   : > { %p179_p1 = scmp.eq.s32.totalorder %s178_s9, 0  ;;  %p192_p2 = scmp.eq.s32.totalorder %s1400_s28, 1 }
   0x9   : > { %p197_p3 = scmp.ne.s32.totalorder %s1319_s25, %s1315_s24  ;;  %p198_p4 = scmp.eq.s32.totalorder %s973_s29, 1 }
   0xa   : > { %s1415_s10 = scalar_select %p179_p1, %s1323_s26, %s181_s8  }
   0xb   : > { %p1417_p5 = por %p192_p2, %p191_p0  ;;  %p1421_p6 = por %p198_p4, %p197_p3 }
   0xc   : > { %p974_p7 = scmp.ge.s32.totalorder %s1327_s27, 1  ;;  %p205_p8 = scmp.lt.s32.totalorder %s1327_s27, 3 }
   0xd   : > { %s1653_s11 = scalar_select %p1417_p5, 1, 0 }
   0xe   : > { %s1654_s12 = scalar_select %p1421_p6, 1, 0 }
   0xf   : > { %p1650_p9 = scmp.eq.s32.totalorder %s1400_s28, 0  ;;  %p1428_p10 = pnand %p974_p7, %p205_p8 }
  0x10   : > { %s1329_s14 = smov [#allocation2]   ;;  %s1330_s16 = smov [#allocation5]  }
  0x11   : > { %s1655_s13 = scalar_select %p1428_p10, 1, 0 }
  0x12   : > { %s221_s15 = sshll.u32 %s1329_s14, 4  ;;  %p1110_p11 = pneg %p1428_p10  ;;  %s222_s15 = int_to_ptr.vmem [resolvable:$true] %s221_s15 }
  0x13   : > { %s234_s17 = sshll.u32 %s1330_s16, 4  ;;  %s1201_s21 = scalar_lea.hbm %s1644_s2, 64  ;;  %s1440_s17 = int_to_ptr.vmem [resolvable:$true] %s234_s17 }
  0x14   : > { %p1436_p12 = pnand %p1650_p9, %p1110_p11  ;;  %p1202_p13 = scmp.ne.s32.totalorder %s1644_s2, %s1201_s21 }
  0x15   : > { %p1208_p3 = scmp.lt.u32.totalorder %s1201_s21, %s1644_s2 }
  0x16   : > { %p1203_p0 = pneg %p1436_p12 }
  0x18   : > { %p1204_p1 = pnand %p1203_p0, %p1202_p13 }
  0x1a   : > { %p1205_p2 = pneg %p1204_p1 }
  0x1c   : > { %p1210_p4 = pnand %p1208_p3, %p1205_p2 }
  0x1e   : > { %1213 = shalt.err (!%p1210_p4)
}
  0x1f   : > { %s1214_s9 = scalar_lea.vmem %s222_s15, 64  ;;  %p1222_p9 = scmp.lt.s32.totalorder %s222_s15, %s222_s15 }
  0x20   : > { %p1215_p7 = scmp.ne.s32.totalorder %s222_s15, %s1214_s9  ;;  %p1223_p6 = scmp.lt.s32.totalorder %s1214_s9, %s1214_s9 }
  0x22   : > { %p1217_p8 = pnand %p1215_p7, %p1203_p0  ;;  %p1224_p5 = por %p1223_p6, %p1222_p9 }
  0x24   : > { %p1218_p11 = pneg %p1217_p8 }
  0x26   : > { %p1225_p10 = pnand %p1224_p5, %p1218_p11 }
  0x28   : > { %1228 = shalt.err (!%p1225_p10)
}
  0x29   : > { %1113 = dma.hbm_to_vmem [thread:$0]  (!%p1436_p12), %s1644_s2, 64, %s222_s15, [#allocation3]  }
  0x2a   : > { %s1229_s21 = scalar_lea.hbm %s1646_s4, 384 }
  0x2b   : > { %p1230_p13 = scmp.ne.s32.totalorder %s1646_s4, %s1229_s21  ;;  %p1236_p9 = scmp.lt.u32.totalorder %s1229_s21, %s1646_s4 }
  0x2d   : > { %p1232_p6 = pnand %p1230_p13, %p1203_p0 }
  0x2f   : > { %p1233_p5 = pneg %p1232_p6 }
  0x31   : > { %p1238_p10 = pnand %p1236_p9, %p1233_p5 }
  0x33   : > { %1241 = shalt.err (!%p1238_p10)
}
  0x34   : > { %s1242_s15 = scalar_lea.vmem %s1440_s17, 384  ;;  %p1250_p4 = scmp.lt.s32.totalorder %s1440_s17, %s1440_s17 }
  0x35   : > { %p1243_p1 = scmp.ne.s32.totalorder %s1440_s17, %s1242_s15  ;;  %p1251_p7 = scmp.lt.s32.totalorder %s1242_s15, %s1242_s15 }
  0x37   : > { %p1245_p2 = pnand %p1243_p1, %p1203_p0  ;;  %p1252_p8 = por %p1251_p7, %p1250_p4 }
  0x39   : > { %p1246_p3 = pneg %p1245_p2 }
  0x3b   : > { %p1253_p11 = pnand %p1252_p8, %p1246_p3 }
  0x3d   : > { %1256 = shalt.err (!%p1253_p11)
}
  0x3e   : > { %s1331_s9 = smov 64   ;;  %s1332_s14 = smov 4  }
  0x3f   : > { %1116 = dma.hbm_to_vmem [thread:$0]  (!%p1436_p12), %s1646_s4, 384, %s1440_s17, [#allocation6], %s1331_s9, %s1331_s9, %s1332_s14  }
  0x40   : > { %p1657_p13 = scmp.ne.s32.totalorder %s1655_s13, 0 }
  0x41   : > { %p1658_p0 = scmp.eq.s32.totalorder (!%p1657_p13), %s1400_s28, 0 }
  0x42   : > { %265 = sbr.rel (%p1657_p13) target bundleno = 1409 (0x581), region = 48 }
  0x49   : > { %1302 = dma.done.wait (%p1658_p0), [#allocation3], 64   ;;  %p1659_p6 = pmov %p1658_p0 }
  0x4a   : > { %p1660_p5 = pmov %p1658_p0 }
  0x4b   : > { %1304 = vsyncadd (%p1659_p6), [#allocation3], 4294967232 }
  0x4c   : > { %1306 = dma.done.wait (%p1660_p5), [#allocation6], 384   ;;  %p1661_p9 = pmov %p1658_p0 }
  0x4d   : > { %s982_s18 = sshll.u32 %s1400_s28, 2  ;;  %v1167_v0 = vld [vmem:[%s1643_s1] sm:$0xff]   ;;  %v1168_v1 = vld [vmem:[%s1643_s1 + $0x8] sm:$0xff]   ;;  %v1169_v2 = vld [vmem:[%s1643_s1 + $0x10] sm:$0xff]   ;;  %vm368_vm0 = vcmask 654336   ;;  %vm459_vm1 = vcmask 392192  }
  0x4e   : > { %1308 = vsyncadd (%p1661_p9), [#allocation6], 4294966912  ;;  %p302_p10 = scmp.lt.s32.totalorder %s982_s18, 7  ;;  %1048 = vmatprep.subr.bf16.mxu0 %v1167_v0  ;;  %v1170_v4 = vld [vmem:[%s1643_s1 + $0x18] sm:$0xff]   ;;  %v1174_v5 = vld [vmem:[%s1645_s3] sm:$0xff]   ;;  %s1333_s29 = smov 80  }
  0x4f   : > { %1049 = vmatpush3.bf16.msra.mxu0 %v1167_v0  ;;  %1062 = vmatprep.subr.bf16.mxu1 %v1174_v5  ;;  %v1171_v6 = vld [vmem:[%s1643_s1 + $0x20] sm:$0xff]   ;;  %v1175_v8 = vld [vmem:[%s1645_s3 + $0x8] sm:$0xff]   ;;  %v1176_v9 = vld [vmem:[%s1645_s3 + $0x10] sm:$0xff]   ;;  %vm697_vm2 = vcmask 261120   ;;  %s1335_s22 = smov 48   ;;  %s298_s23 = sand.u32 1, %s1319_s25  }
  0x50   : > { %s1669_s18 = smov (!%p302_p10, %s982_s18), 7  ;;  %1050 = vmatprep.subr.bf16.mxu0 %v1168_v1  ;;  %1063 = vmatpush3.bf16.msra.mxu1 %v1174_v5  ;;  %v1177_v10 = vld [vmem:[#allocation5] sm:$0xff]   ;;  %v984_v11 = vld [vmem:[#allocation2] ss:$0 sm:$0xff]  ;;  %v1178_v27 = vld [vmem:[#allocation5 + $0x8] sm:$0xff]   ;;  %s1021_s9 = sshll.u32 %s1400_s28, 9 }
  0x51   : > { %s983_s17 = sshll.u32 %s1669_s18, 2  ;;  %1064 = vmatprep.subr.bf16.mxu1 %v1175_v8  ;;  %v1179_v29 = vld [vmem:[#allocation5 + $0x10] sm:$0xff]   ;;  %v1180_v30 = vld [vmem:[%s1647_s5] sm:$0xff]   ;;  %v1181_v33 = vld [vmem:[%s1647_s5 + $0x8] sm:$0xff]   ;;  %s1334_s18 = smov 32  }
  0x52   : > { %s305_s8 = scalar_lea.vmem %s1642_s0, %s983_s17  ;;  %v1182_v34 = vld [vmem:[%s1647_s5 + $0x10] sm:$0xff]   ;;  %v1000_v39 = vld [vmem:[#allocation2 + $0x2] ss:$0 sm:$0xff]  ;;  %v1006_v54 = vld [vmem:[#allocation2 + $0x3] ss:$0 sm:$0xff]  ;;  %s1595_s19 = scalar_lea.hbm %s1649_s7, %s1021_s9 }
  0x53   : > { %v1172_v3 = vld [vmem:[%s305_s8] sm:$0xff]   ;;  %1051 = vmatpush3.bf16.msra.mxu0 %v1168_v1  ;;  %v1173_v7 = vld [vmem:[%s305_s8 + $0x8] sm:$0xff]   ;;  %s1601_s28 = scalar_lea.sflag [#allocation4], %s298_s23  ;;  %p1662_p1 = scmp.ne.s32.totalorder %s1653_s11, 0 }
  0x54   : > { %1058 = vmatprep.mubr.msk.bf16.mxu0 %vm368_vm0, %v1172_v3  ;;  %1052 = vmatprep.subr.bf16.mxu0 %v1169_v2  ;;  %v994_v3 = vld [vmem:[#allocation2 + $0x1] ss:$0 sm:$0xff]  ;;  %s1336_s17 = smov [#allocation7]  }
  0x55   : > { %1065 = vmatpush3.bf16.msra.mxu1 %v1175_v8  ;;  %v1183_v5 = vld [vmem:[%s1648_s6] sm:$0xff]   ;;  %s1261_s20 = sshll.u32 %s1336_s17, 4  ;;  %s1262_s20 = int_to_ptr.vmem [resolvable:$false] %s1261_s20 }
  0x56   : > { %1066 = vmatprep.subr.bf16.mxu1 %v1176_v9  ;;  %s1263_s13 = scalar_lea.vmem %s1262_s20, 1024 }
  0x57   : > { %1053 = vmatpush3.bf16.msra.mxu0 %v1169_v2 }
  0x58   : > { %1054 = vmatprep.subr.bf16.mxu0 %v1170_v4 }
  0x59   : > { %1067 = vmatpush3.bf16.msra.mxu1 %v1176_v9 }
  0x5a   : > { %1072 = vmatprep.subr.bf16.mxu1 %v1177_v10 }
  0x5b   : > { %1055 = vmatpush3.bf16.msra.mxu0 %v1170_v4 }
  0x5c   : > { %1056 = vmatprep.subr.bf16.mxu0 %v1171_v6 }
  0x5f   : > { %1057 = vmatpush3.bf16.msra.mxu0 %v1171_v6  ;;  %v1184_v6 = vld [vmem:[%s1648_s6 + $0x8] sm:$0xff]  }
  0x60   : > { %1082 = vmatprep.subr.bf16.mxu0 %v1180_v30 }
  0x62   : > { %1059 = vmatmul.mubr.msk.bf16.vlgmr.msra.gmra.mrb[0].mxu0 %vm368_vm0, %v1173_v7 }
  0x63   : > { %1083 = vmatpush3.bf16.msra.mxu0 %v1180_v30 }
  0x64   : > { %1084 = vmatprep.subr.bf16.mxu0 %v1181_v33 }
  0x67   : > { %1085 = vmatpush3.bf16.msra.mxu0 %v1181_v33 }
  0x68   : > { %1086 = vmatprep.subr.bf16.mxu0 %v1182_v34 }
  0x6b   : > { %1087 = vmatpush3.bf16.msra.mxu0 %v1182_v34 }
 0x135   : > { %v1060_v12 = vpop.f32.mrb[0].mxu0 }
 0x136   : > { %v409_v13 = vpop.f32.mrb[1].mxu0  ;;  %v1531_v16 = vadd.f32 %v1060_v12, %v984_v11 }
 0x137   : > { %v1529_v14 = vadd.f32 %v984_v11, %v409_v13  ;;  %v1061_v15 = vpop.f32.mrb[2].mxu0 }
 0x138   : > { %v1533_v17 = vadd.f32 %v1061_v15, %v984_v11  ;;  %v412_v18 = vpop.f32.mrb[3].mxu0  ;;  %v426_v24 = vmax.f32 %v1531_v16, 0.0 }
 0x139   : > { %v1535_v19 = vadd.f32 %v984_v11, %v412_v18  ;;  %v424_v22 = vmax.f32 %v1529_v14, 0.0 }
 0x13a   : > { %v427_v20 = vmax.f32 %v1533_v17, 0.0  ;;  %v516_v28 = vpack.c.bf16 %v1533_v17, %v1531_v16 }
 0x13b   : > { %v515_v21 = vpack.c.bf16 %v1535_v19, %v1529_v14  ;;  %v425_v23 = vmax.f32 %v1535_v19, 0.0 }
 0x13c   : > { %v429_v26 = vpack.c.bf16 %v427_v20, %v426_v24 }
 0x13d   : > { %530 = vrot.lane.b32.xlu0 %v515_v21, %s1333_s29  ;;  %v428_v25 = vpack.c.bf16 %v425_v23, %v424_v22 }
 0x13f   : > { %1068 = vmatprep.mubr.msk.bf16.mxu1 %vm459_vm1, %v428_v25 }
 0x140   : > { %1069 = vmatmul.mubr.msk.bf16.vlgmr.msra.gmra.mrb[0].mxu1 %vm459_vm1, %v429_v26 }
 0x141   : > { %532 = vrot.lane.b32.xlu0 %v516_v28, %s1333_s29  ;;  %1073 = vmatpush3.bf16.msra.mxu1 %v1177_v10  ;;  %s981_s29 = sshll.u32 %s298_s23, 5 }
 0x142   : > { %1074 = vmatprep.subr.bf16.mxu1 %v1178_v27  ;;  %s300_s8 = scalar_lea.vmem [#allocation7], %s981_s29 }
 0x143   : > { %s889_s15 = sshll.u32 %s300_s8, 4  ;;  %s1589_s15 = int_to_ptr.vmem [resolvable:$true] %s889_s15 }
 0x144   : > { %p1264_p4 = scmp.lt.s32.totalorder %s1589_s15, %s1262_s20 }
 0x145   : > { %1075 = vmatpush3.bf16.msra.mxu1 %v1178_v27 }
 0x146   : > { %1076 = vmatprep.subr.bf16.mxu1 %v1179_v29 }
 0x149   : > { %1077 = vmatpush3.bf16.msra.mxu1 %v1179_v29 }
 0x14a   : > { %1092 = vmatprep.subr.bf16.mxu1 %v1183_v5 }
 0x1af   : > { %v531_v31 = vpop.permute.xlu0 %530 }
 0x1b0   : > { %1078 = vmatprep.mubr.msk.bf16.mxu1 %vm459_vm1, %v531_v31 }
 0x1b3   : > { %v533_v32 = vpop.permute.xlu0 %532 }
 0x1b4   : > { %1079 = vmatmul.mubr.msk.bf16.vlgmr.msra.gmra.mrb[4].mxu1 %vm459_vm1, %v533_v32 }
 0x1b5   : > { %1093 = vmatpush3.bf16.msra.mxu1 %v1183_v5 }
 0x1b6   : > { %1094 = vmatprep.subr.bf16.mxu1 %v1184_v6 }
 0x1b9   : > { %1095 = vmatpush3.bf16.msra.mxu1 %v1184_v6 }
 0x213   : > { %v1070_v35 = vpop.f32.mrb[0].mxu1 }
 0x214   : > { %v500_v36 = vpop.f32.mrb[1].mxu1  ;;  %v509_v8 = vadd.f32 %v1070_v35, %v994_v3 }
 0x215   : > { %v1071_v37 = vpop.f32.mrb[2].mxu1  ;;  %v501_v4 = vadd.f32 %v994_v3, %v500_v36 }
 0x216   : > { %v503_v38 = vpop.f32.mrb[3].mxu1  ;;  %v512_v9 = vadd.f32 %v1071_v37, %v994_v3 }
 0x217   : > { %v504_v7 = vadd.f32 %v994_v3, %v503_v38 }
 0x287   : > { %v1080_v40 = vpop.f32.mrb[4].mxu1 }
 0x288   : > { %v601_v41 = vadd.f32 %v1080_v40, %v1000_v39  ;;  %v592_v42 = vpop.f32.mrb[5].mxu1 }
 0x289   : > { %v593_v43 = vadd.f32 %v1000_v39, %v592_v42  ;;  %v1081_v44 = vpop.f32.mrb[6].mxu1 }
 0x28a   : > { %v604_v45 = vadd.f32 %v1081_v44, %v1000_v39  ;;  %v595_v46 = vpop.f32.mrb[7].mxu1  ;;  %v609_v48 = vmax.f32 %v601_v41, 0.0 }
 0x28b   : > { %v596_v47 = vadd.f32 %v1000_v39, %v595_v46  ;;  %v607_v50 = vmax.f32 %v593_v43, 0.0 }
 0x28c   : > { %v610_v49 = vmax.f32 %v604_v45, 0.0 }
 0x28d   : > { %v608_v51 = vmax.f32 %v596_v47, 0.0 }
 0x28e   : > { %v612_v52 = vpack.c.bf16 %v610_v49, %v609_v48 }
 0x28f   : > { %v611_v53 = vpack.c.bf16 %v608_v51, %v607_v50 }
 0x291   : > { %1088 = vmatprep.mubr.msk.bf16.mxu0 %vm459_vm1, %v611_v53 }
 0x292   : > { %1089 = vmatmul.mubr.msk.bf16.vlgmr.msra.gmra.mrb[4].mxu0 %vm459_vm1, %v612_v52 }
 0x365   : > { %v1090_v55 = vpop.f32.mrb[4].mxu0 }
 0x366   : > { %v691_v56 = vadd.f32 %v1090_v55, %v1006_v54  ;;  %v682_v57 = vpop.f32.mrb[5].mxu0 }
 0x367   : > { %v683_v58 = vadd.f32 %v1006_v54, %v682_v57  ;;  %v1091_v59 = vpop.f32.mrb[6].mxu0 }
 0x368   : > { %v685_v60 = vpop.f32.mrb[7].mxu0  ;;  %v704_v61 = vsel %vm697_vm2, %v691_v56, -inf  ;;  %v694_v0 = vadd.f32 %v1091_v59, %v1006_v54 }
 0x369   : > { %v686_v62 = vadd.f32 %v1006_v54, %v685_v60  ;;  %705 = vmax.xlane.f32.xlu0 %v704_v61  ;;  %v698_v63 = vsel %vm697_vm2, %v683_v58, -inf }
 0x36a   : > { %699 = vmax.xlane.f32.xlu1 %v698_v63  ;;  %v707_v2 = vsel %vm697_vm2, %v694_v0, -inf }
 0x36b   : > { %v701_v1 = vsel %vm697_vm2, %v686_v62, -inf }
 0x36e   : > { %702 = vmax.xlane.f32.xlu1 %v701_v1 }
 0x372   : > { %708 = vmax.xlane.f32.xlu1 %v707_v2 }
 0x37f   : > { %831 = vrot.lane.b32.xlu0 %v501_v4, %s1334_s18 }
 0x383   : > { %811 = vrot.lane.b32.xlu1 %v1529_v14, %s1334_s18 }
 0x387   : > { %813 = vrot.lane.b32.xlu1 %v1535_v19, %s1334_s18 }
 0x38b   : > { %815 = vrot.lane.b32.xlu1 %v1531_v16, %s1334_s18 }
 0x38f   : > { %817 = vrot.lane.b32.xlu1 %v1533_v17, %s1334_s18 }
 0x393   : > { %833 = vrot.lane.b32.xlu1 %v504_v7, %s1334_s18 }
 0x397   : > { %835 = vrot.lane.b32.xlu1 %v509_v8, %s1334_s18 }
 0x39b   : > { %837 = vrot.lane.b32.xlu1 %v512_v9, %s1334_s18  ;;  %s1257_s18 = scalar_lea.vmem %s1589_s15, 512 }
 0x39c   : > { %p1258_p12 = scmp.ne.s32.totalorder %s1589_s15, %s1257_s18  ;;  %p1265_p7 = scmp.lt.s32.totalorder %s1263_s13, %s1257_s18 }
 0x39e   : > { %p1259_p2 = pnand %p1258_p12, %p1662_p1  ;;  %p1266_p8 = por %p1265_p7, %p1264_p4 }
 0x3a0   : > { %p1260_p3 = pneg %p1259_p2 }
 0x3a2   : > { %p1267_p11 = pnand %p1266_p8, %p1260_p3 }
 0x3f6   : > { %v706_v11 = vpop.xlane.xlu0 %705 }
 0x3f7   : > { %v700_v10 = vpop.xlane.xlu1 %699  ;;  %v712_v13 = vsub.f32 %v691_v56, %v706_v11 }
 0x3f8   : > { %v710_v12 = vsub.f32 %v683_v58, %v700_v10 }
 0x3f9   : > { %v718_v19 = vmul.f32 1.442695, %v712_v13 }
 0x3fa   : > { %v714_v14 = vmul.f32 1.442695, %v710_v12  ;;  %v832_v50 = vpop.permute.xlu0 %831 }
 0x3fb   : > { %v703_v15 = vpop.xlane.xlu1 %702 }
 0x3fc   : > { %v711_v16 = vsub.f32 %v686_v62, %v703_v15  ;;  %1185 = vpow2.f32 %v714_v14 }
 0x3fe   : > { %v716_v18 = vmul.f32 1.442695, %v711_v16 }
 0x3ff   : > { %v709_v20 = vpop.xlane.xlu1 %708 }
 0x400   : > { %1187 = vpow2.f32 %v716_v18  ;;  %v713_v21 = vsub.f32 %v694_v0, %v709_v20 }
 0x401   : > { %1189 = vpow2.f32 %v718_v19 }
 0x402   : > { %v720_v17 = vmul.f32 1.442695, %v713_v21 }
 0x403   : > { %v812_v44 = vpop.permute.xlu1 %811 }
 0x404   : > { %1191 = vpow2.f32 %v720_v17 }
 0x406   : > { %v1186_v22 = vpop.eup %1185 }
 0x407   : > { %v814_v45 = vpop.permute.xlu1 %813 }
 0x40a   : > { %v1188_v23 = vpop.eup %1187 }
 0x40b   : > { %v722_v24 = vpack.c.bf16 %v1188_v23, %v1186_v22  ;;  %v1190_v25 = vpop.eup %1189  ;;  %v816_v46 = vpop.permute.xlu1 %815 }
 0x40d   : > { %1096 = vmatprep.mubr.msk.bf16.mxu1 %vm697_vm2, %v722_v24 }
 0x40e   : > { %v1192_v26 = vpop.eup %1191 }
 0x40f   : > { %v723_v27 = vpack.c.bf16 %v1192_v26, %v1190_v25  ;;  %v818_v47 = vpop.permute.xlu1 %817 }
 0x411   : > { %1097 = vmatmul.mubr.msk.bf16.vlgmr.msra.gmra.mrb[8].mxu1 %vm697_vm2, %v723_v27 }
 0x413   : > { %v834_v48 = vpop.permute.xlu1 %833 }
 0x417   : > { %v836_v49 = vpop.permute.xlu1 %835 }
 0x41b   : > { %v838_v52 = vpop.permute.xlu1 %837 }
 0x4e4   : > { %v1098_v28 = vpop.f32.mrb[8].mxu1 }
 0x4e5   : > { %v797_v29 = vmax.f32 %v1098_v28, 1e-20  ;;  %v780_v30 = vpop.f32.mrb[9].mxu1 }
 0x4e6   : > { %v795_v31 = vmax.f32 %v780_v30, 1e-20  ;;  %v1099_v32 = vpop.f32.mrb[10].mxu1 }
 0x4e7   : > { %1193 = vrcp.f32 %v797_v29  ;;  %v783_v33 = vpop.f32.mrb[11].mxu1  ;;  %v798_v35 = vmax.f32 %v1099_v32, 1e-20 }
 0x4e8   : > { %1195 = vrcp.f32 %v795_v31  ;;  %v796_v34 = vmax.f32 %v783_v33, 1e-20 }
 0x4ea   : > { %1197 = vrcp.f32 %v796_v34 }
 0x4eb   : > { %1199 = vrcp.f32 %v798_v35 }
 0x4f1   : > { %v1194_v36 = vpop.eup %1193 }
 0x4f2   : > { %v1196_v37 = vpop.eup %1195  ;;  %v805_v38 = vmul.f32 %v1194_v36, %v1190_v25 }
 0x4f3   : > { %v803_v39 = vmul.f32 %v1196_v37, %v1186_v22 }
 0x4f4   : > { %v1198_v40 = vpop.eup %1197  ;;  %851 = vrot.lane.b32.xlu0 %v805_v38, %s1335_s22  ;;  %v825_v51 = vmul.f32 %v816_v46, %v805_v38 }
 0x4f5   : > { %847 = vrot.lane.b32.xlu1 %v803_v39, %s1335_s22  ;;  %v804_v41 = vmul.f32 %v1198_v40, %v1188_v23  ;;  %v1200_v42 = vpop.eup %1199  ;;  %v823_v53 = vmul.f32 %v812_v44, %v803_v39 }
 0x4f6   : > { %v806_v43 = vmul.f32 %v1200_v42, %v1192_v26  ;;  %v861_v54 = vsel %vm697_vm2, %v825_v51, %v836_v49 }
 0x4f7   : > { %v824_v56 = vmul.f32 %v814_v45, %v804_v41  ;;  %v859_v59 = vsel %vm697_vm2, %v823_v53, %v832_v50 }
 0x4f8   : > { %v826_v63 = vmul.f32 %v818_v47, %v806_v43 }
 0x4f9   : > { %849 = vrot.lane.b32.xlu1 %v804_v41, %s1335_s22  ;;  %v860_v0 = vsel %vm697_vm2, %v824_v56, %v834_v48 }
 0x4fa   : > { %v862_v4 = vsel %vm697_vm2, %v826_v63, %v838_v52 }
 0x4fd   : > { %853 = vrot.lane.b32.xlu1 %v806_v43, %s1335_s22 }
 0x566   : > { %v852_v55 = vpop.permute.xlu0 %851 }
 0x567   : > { %v865_v57 = vsel %vm459_vm1, %v861_v54, %v852_v55  ;;  %v848_v58 = vpop.permute.xlu1 %847 }
 0x568   : > { %v869_v60 = vsel %vm368_vm0, %v865_v57, 0.0  ;;  %v863_v61 = vsel %vm459_vm1, %v859_v59, %v848_v58 }
 0x569   : > { %873 = vst [vmem:[%s300_s8 + $0x10] sm:$0xff] %v869_v60  ;;  %v867_v62 = vsel %vm368_vm0, %v863_v61, 0.0 }
 0x56a   : > { %871 = vst [vmem:[%s300_s8] sm:$0xff] %v867_v62 }
 0x56b   : > { %v850_v1 = vpop.permute.xlu1 %849 }
 0x56c   : > { %v864_v2 = vsel %vm459_vm1, %v860_v0, %v850_v1 }
 0x56d   : > { %v868_v3 = vsel %vm368_vm0, %v864_v2, 0.0 }
 0x56e   : > { %872 = vst [vmem:[%s300_s8 + $0x8] sm:$0xff] %v868_v3 }
 0x56f   : > { %v854_v5 = vpop.permute.xlu1 %853 }
 0x570   : > { %v866_v6 = vsel %vm459_vm1, %v862_v4, %v854_v5 }
 0x571   : > { %v870_v7 = vsel %vm368_vm0, %v866_v6, 0.0 }
 0x572   : > { %874 = vst [vmem:[%s300_s8 + $0x18] sm:$0xff] %v870_v7 }
 0x573   : > { %1270 = shalt.err (!%p1267_p11)
}
 0x574   : > { %s1271_s21 = scalar_lea.hbm %s1595_s19, 512  ;;  %s1275_s29 = scalar_lea.hbm %s1649_s7, 1024 }
 0x575   : > { %p1272_p13 = scmp.ne.s32.totalorder %s1595_s19, %s1271_s21  ;;  %p1276_p5 = scmp.lt.u32.totalorder %s1595_s19, %s1649_s7 }
 0x576   : > { %p1277_p9 = scmp.lt.u32.totalorder %s1275_s29, %s1271_s21  ;;  %p1279_p12 = scmp.lt.u32.totalorder %s1271_s21, %s1595_s19 }
 0x577   : > { %p1273_p0 = pnand %p1272_p13, %p1662_p1 }
 0x578   : > { %p1278_p10 = por %p1277_p9, %p1276_p5 }
 0x579   : > { %p1274_p6 = pneg %p1273_p0 }
 0x57a   : > { %p1280_p2 = por %p1279_p12, %p1278_p10 }
 0x57c   : > { %p1281_p3 = pnand %p1280_p2, %p1274_p6 }
 0x57e   : > { %1284 = shalt.err (!%p1281_p3)
}
 0x57f   : > { %s1337_s14 = smov 128   ;;  %s1338_s16 = smov 8  }
 0x580   : > { %1108 = dma.vmem_to_hbm [thread:$0]  (%p1662_p1), %s1589_s15, 512, %s1595_s19, %s1601_s28, %s1337_s14, %s1337_s14, %s1338_s16  }
 0x581 PF: > { %p1125_p4 = scmp.ge.s32.totalorder %s1327_s27, 2  ;;  %s904_s18 = sand.u32 1, %s1315_s24  }
 0x582   : > { %p1663_p7 = scmp.ne.s32.totalorder %s1654_s12, 0  ;;  %s905_s17 = scalar_lea.sflag [#allocation4], %s904_s18 }
 0x584   : > { %p1118_p8 = pnand %p1125_p4, %p1663_p7 }
 0x586   : > { %1310 = dma.done.wait (!%p1118_p8), %s905_s17, 512  }
 0x587   : > { %1312 = vsyncadd (!%p1118_p8), %s905_s17, 4294966784  ;;  %p19_p11 = scmp.ge.s32.totalorder %s1404_s30, 4   ;;  %s1664_s24 = smov %s1319_s25 }
 0x588   : > { %s1665_s25 = smov %s1323_s26  ;;  %s1666_s26 = smov %s1415_s10 }
 0x589   : > { %s1667_s27 = smov %s1404_s30  ;;  %21 = sbr.rel (!%p19_p11) target bundleno = 5 (0x5), region = 92 }
 0x590   :  { %910 = vsyncpa [#allocation3], 1 }
 0x591   :  { %912 = vsyncpa [#allocation3 + $0x1], 1 }
 0x592   :  { %913 = vsyncpa [#allocation6], 1 }
 0x593   :  { %914 = vsyncpa [#allocation4], 1 }
 0x594   :  { %916 = vsyncpa [#allocation4 + $0x1], 1 }

</bundles_post_ra>
